<compile_context>
chip_gen: v7x
topology: tpu7x:2x2x1
jax: 0.10.0
libtpu: 0.0.40
codegen_flags: <defaults>
</compile_context>

<pallas_src>
import functools

import jax
import jax.numpy as jnp
from jax.experimental import pallas as pl
from jax.experimental.pallas import tpu as pltpu


def _reward_kernel(feat_ref, w1_ref, b1_ref, w2_ref, b2_ref, w3_ref, b3_ref,
                   out_ref, acc_ref, *, seq_len, s_tile):
    s = pl.program_id(1)

    # --- init accumulator at the first sequence tile -------------------------
    @pl.when(s == 0)
    def _():
        acc_ref[...] = jnp.zeros_like(acc_ref)

    # --- accumulate per-tile sequence sum (f32 accumulate, any input dtype) --
    feats = feat_ref[...].astype(jnp.float32)            # [TB, TS, D]
    if seq_len % s_tile != 0:
        # Ragged last tile: mask rows beyond the true sequence length.
        row = jax.lax.broadcasted_iota(jnp.int32, feats.shape, 1) + s * s_tile
        feats = jnp.where(row < seq_len, feats, 0.0)
    acc_ref[...] += jnp.sum(feats, axis=1)                # [TB, D]

    # --- finalize: mean + 3-layer MLP, once, on the last sequence tile -------
    @pl.when(s == pl.num_programs(1) - 1)
    def _():
        pooled = acc_ref[...] * (1.0 / seq_len)           # [TB, D] f32

        h1 = jnp.dot(pooled.astype(w1_ref.dtype), w1_ref[...],
                     preferred_element_type=jnp.float32)
        h1 = jnp.maximum(h1 + b1_ref[...].astype(jnp.float32), 0.0)

        h2 = jnp.dot(h1.astype(w2_ref.dtype), w2_ref[...],
                     preferred_element_type=jnp.float32)
        h2 = jnp.maximum(h2 + b2_ref[...].astype(jnp.float32), 0.0)

        # Final Linear(256,1) as a lane-wise multiply + reduce (w3 is [1,256]);
        # an N=1 MXU matmul would waste the systolic array / result path.
        out = jnp.sum(h2 * w3_ref[...].astype(jnp.float32),
                      axis=-1, keepdims=True)
        out = out + b3_ref[...].astype(jnp.float32)       # [TB, 1]
        out_ref[...] = out.astype(out_ref.dtype)


def _pick_tiles(B, S, D, feat_itemsize):
    """Largest streaming tile that keeps the double-buffered feature DMA small
    enough to fit every TPU generation (v7x: 64 MiB VMEM/TC) with headroom."""
    TB = B if B <= 8 else 8
    stream_budget = 24 << 20                       # 2 buffers of features
    max_ts = max(stream_budget // (2 * TB * D * feat_itemsize), 1)
    ts = min(S, max_ts)
    quantum = 16 if feat_itemsize < 4 else 8       # bf16 packs (16,128)
    if ts < S:
        ts = max((ts // quantum) * quantum, quantum)
    return TB, ts


def _vmem_limit_bytes(TB, TS, D, feat_itemsize, param_itemsize):
    feat = 2 * TB * TS * D * feat_itemsize                          # dbl-buffered stream
    weights = 2 * ((D * 512 + 512) + (512 * 256 + 256) + (256 + 1)) * param_itemsize
    out = 2 * TB * 4
    acc = TB * D * 4
    needed = feat + weights + out + acc
    return min(max(int(needed * 1.25), 16 << 20), 56 << 20)


def reward_model_forward(features, params, *, tb=None, ts=None):
    """features: [B, S, D] (f32 or bf16), params: dict of MLP weights/biases.

    Weights are stored [in, out]; w3 is stored as a [1, 256] row; biases are
    [1, N]. Returns [B, 1] float32 rewards.
    """
    B, S, D = features.shape
    w1, b1, w2, b2, w3, b3 = (params["w1"], params["b1"], params["w2"],
                              params["b2"], params["w3"], params["b3"])

    TB_auto, TS_auto = _pick_tiles(B, S, D, features.dtype.itemsize)
    TB = tb if tb is not None else TB_auto
    TS = ts if ts is not None else TS_auto
    nb, ns = pl.cdiv(B, TB), pl.cdiv(S, TS)

    def _resident(arr):  # constant index_map -> weight stays resident, no re-DMA
        return pl.BlockSpec(arr.shape, lambda b, s: (0,) * arr.ndim)

    grid_spec = pltpu.PrefetchScalarGridSpec(
        num_scalar_prefetch=0,
        grid=(nb, ns),                                   # reduction axis last
        in_specs=[
            pl.BlockSpec((TB, TS, D), lambda b, s: (b, s, 0)),
            _resident(w1), _resident(b1),
            _resident(w2), _resident(b2),
            _resident(w3), _resident(b3),
        ],
        out_specs=pl.BlockSpec((TB, 1), lambda b, s: (b, 0)),
        scratch_shapes=[pltpu.VMEM((TB, D), jnp.float32)],
    )

    kernel = functools.partial(_reward_kernel, seq_len=S, s_tile=TS)
    return pl.pallas_call(
        kernel,
        out_shape=jax.ShapeDtypeStruct((B, 1), jnp.float32),
        grid_spec=grid_spec,
        compiler_params=pltpu.CompilerParams(
            dimension_semantics=("parallel", "arbitrary"),
            vmem_limit_bytes=_vmem_limit_bytes(
                TB, TS, D, features.dtype.itemsize, w1.dtype.itemsize),
        ),
    )(features, w1, b1, w2, b2, w3, b3)


def init_params(d_model, key):
    """Deterministic init mimicking nn.Linear default (uniform +-1/sqrt(fan_in)).
    Weights are [in, out]; the last layer's weight is stored as a [1, 256] row."""
    ks = jax.random.split(key, 6)

    def lin(kw, kb, fan_in, fan_out):
        bound = 1.0 / jnp.sqrt(fan_in)
        w = jax.random.uniform(kw, (fan_in, fan_out), jnp.float32, -bound, bound)
        b = jax.random.uniform(kb, (1, fan_out), jnp.float32, -bound, bound)
        return w, b

    w1, b1 = lin(ks[0], ks[1], d_model, 512)
    w2, b2 = lin(ks[2], ks[3], 512, 256)
    w3, b3 = lin(ks[4], ks[5], 256, 1)
    return {"w1": w1, "b1": b1, "w2": w2, "b2": b2,
            "w3": w3.T, "b3": b3}                      # w3 as [1, 256]


def reward_model_reference(features, p):
    pooled = features.astype(jnp.float32).mean(axis=1)
    h1 = jnp.maximum(pooled @ p["w1"] + p["b1"], 0.0)
    h2 = jnp.maximum(h1 @ p["w2"] + p["b2"], 0.0)
    return jnp.sum(h2 * p["w3"], axis=-1, keepdims=True) + p["b3"]


if __name__ == "__main__":
    key = jax.random.PRNGKey(0)
    k_feat, k_feat2, k_param = jax.random.split(key, 3)

    batch, seq, d_model = 2, 16, 32
    # `features` stands in for base_model(x).hidden_states[-1].
    features = jax.random.normal(k_feat, (batch, seq, d_model), jnp.float32)
    params = init_params(d_model, k_param)

    # Multi-step sequence accumulation (ts=8 -> 2 S grid steps).
    out = reward_model_forward(features, params, ts=8)
    out = jax.block_until_ready(out)
    ref = reward_model_reference(features, params)
    assert out.shape == (batch, 1)
    assert jnp.allclose(out, ref, atol=1e-4, rtol=1e-4), (out, ref)

    # Ragged last sequence tile (seq=12 with ts=8) exercises the mask path.
    features_r = jax.random.normal(k_feat2, (batch, 12, d_model), jnp.float32)
    out_r = jax.block_until_ready(reward_model_forward(features_r, params, ts=8))
    ref_r = reward_model_reference(features_r, params)
    assert jnp.allclose(out_r, ref_r, atol=1e-4, rtol=1e-4), (out_r, ref_r)

    print("KERNEL_OK")
</pallas_src>

<mosaic_0001>
module attributes {stable_mosaic.version = 11 : i64} {
  func.func @_reward_kernel(%arg0: i32, %arg1: i32, %arg2: memref<2x8x32xf32, #tpu.memory_space<vmem>>, %arg3: memref<32x512xf32, #tpu.memory_space<vmem>>, %arg4: memref<1x512xf32, #tpu.memory_space<vmem>>, %arg5: memref<512x256xf32, #tpu.memory_space<vmem>>, %arg6: memref<1x256xf32, #tpu.memory_space<vmem>>, %arg7: memref<1x256xf32, #tpu.memory_space<vmem>>, %arg8: memref<1x1xf32, #tpu.memory_space<vmem>>, %arg9: memref<2x1xf32, #tpu.memory_space<vmem>>, %arg10: memref<2x32xf32, #tpu.memory_space<vmem>>) attributes {dimension_semantics = [#tpu.dimension_semantics<parallel>, #tpu.dimension_semantics<arbitrary>], iteration_bounds = array<i64: 1, 2>, scalar_prefetch = 0 : i64, scratch_operands = 1 : i64, tpu.core_type = #tpu.core_type<tc>, window_params = [{transform_indices = @transform_0, window_bounds = array<i64: 2, 8, 32>}, {pipeline_mode = #tpu.pipeline_mode<synchronous>, transform_indices = @transform_1, window_bounds = array<i64: 32, 512>}, {pipeline_mode = #tpu.pipeline_mode<synchronous>, transform_indices = @transform_2, window_bounds = array<i64: 1, 512>}, {pipeline_mode = #tpu.pipeline_mode<synchronous>, transform_indices = @transform_3, window_bounds = array<i64: 512, 256>}, {pipeline_mode = #tpu.pipeline_mode<synchronous>, transform_indices = @transform_4, window_bounds = array<i64: 1, 256>}, {pipeline_mode = #tpu.pipeline_mode<synchronous>, transform_indices = @transform_5, window_bounds = array<i64: 1, 256>}, {pipeline_mode = #tpu.pipeline_mode<synchronous>, transform_indices = @transform_6, window_bounds = array<i64: 1, 1>}, {transform_indices = @transform_7, window_bounds = array<i64: 2, 1>}]} {
    %c0_i32 = arith.constant 0 : i32
    %0 = arith.cmpi eq, %arg1, %c0_i32 : i32
    %1 = arith.extui %0 : i1 to i32
    %c0_i32_0 = arith.constant 0 : i32
    %2 = arith.cmpi ne, %1, %c0_i32_0 : i32
    scf.if %2 {
      %cst_8 = arith.constant 0.000000e+00 : f32
      %11 = vector.broadcast %cst_8 : f32 to vector<2x32xf32>
      %c0_9 = arith.constant 0 : index
      %c0_10 = arith.constant 0 : index
      %12 = vector.load %arg10[%c0_9, %c0_10] : memref<2x32xf32, #tpu.memory_space<vmem>>, vector<2x32xf32>
      tpu.vector_store %arg10[%c0_9, %c0_10], %11 {strides = array<i32>} : memref<2x32xf32, #tpu.memory_space<vmem>>, vector<2x32xf32>,
    } else {
    }
    %c0 = arith.constant 0 : index
    %c0_1 = arith.constant 0 : index
    %c0_2 = arith.constant 0 : index
    %3 = vector.load %arg2[%c0, %c0_1, %c0_2] : memref<2x8x32xf32, #tpu.memory_space<vmem>>, vector<2x8x32xf32>
    %c0_3 = arith.constant 0 : index
    %c0_4 = arith.constant 0 : index
    %4 = vector.load %arg10[%c0_3, %c0_4] : memref<2x32xf32, #tpu.memory_space<vmem>>, vector<2x32xf32>
    %cst = arith.constant dense<0.000000e+00> : vector<2x32xf32>
    %5 = vector.multi_reduction <add>, %3, %cst [1] : vector<2x8x32xf32> to vector<2x32xf32>
    %6 = arith.addf %4, %5 : vector<2x32xf32>
    %c0_5 = arith.constant 0 : index
    %c0_6 = arith.constant 0 : index
    %7 = vector.load %arg10[%c0_5, %c0_6] : memref<2x32xf32, #tpu.memory_space<vmem>>, vector<2x32xf32>
    tpu.vector_store %arg10[%c0_5, %c0_6], %6 {strides = array<i32>} : memref<2x32xf32, #tpu.memory_space<vmem>>, vector<2x32xf32>,
    %c1_i32 = arith.constant 1 : i32
    %8 = arith.cmpi eq, %arg1, %c1_i32 : i32
    %9 = arith.extui %8 : i1 to i32
    %c0_i32_7 = arith.constant 0 : i32
    %10 = arith.cmpi ne, %9, %c0_i32_7 : i32
    scf.if %10 {
      %c0_8 = arith.constant 0 : index
      %c0_9 = arith.constant 0 : index
      %11 = vector.load %arg10[%c0_8, %c0_9] : memref<2x32xf32, #tpu.memory_space<vmem>>, vector<2x32xf32>
      %cst_10 = arith.constant 6.250000e-02 : f32
      %12 = vector.broadcast %cst_10 : f32 to vector<2x32xf32>
      %13 = arith.mulf %11, %12 : vector<2x32xf32>
      %c0_11 = arith.constant 0 : index
      %c0_12 = arith.constant 0 : index
      %14 = vector.load %arg3[%c0_11, %c0_12] : memref<32x512xf32, #tpu.memory_space<vmem>>, vector<32x512xf32>
      %cst_13 = arith.constant dense<0.000000e+00> : vector<2x512xf32>
      %15 = tpu.matmul %13, %14, %cst_13 {dimension_numbers = #tpu.dot_dimension_numbers<[1], [0], [0], [1], [0, 0, 1, 1], [], []>} : vector<2x32xf32>, vector<32x512xf32>, vector<2x512xf32> -> vector<2x512xf32>
      %c0_14 = arith.constant 0 : index
      %c0_15 = arith.constant 0 : index
      %16 = vector.load %arg4[%c0_14, %c0_15] : memref<1x512xf32, #tpu.memory_space<vmem>>, vector<1x512xf32>
      %17 = vector.broadcast %16 : vector<1x512xf32> to vector<2x512xf32>
      %18 = arith.addf %15, %17 : vector<2x512xf32>
      %cst_16 = arith.constant 0.000000e+00 : f32
      %19 = vector.broadcast %cst_16 : f32 to vector<2x512xf32>
      %20 = arith.maximumf %18, %19 : vector<2x512xf32>
      %c0_17 = arith.constant 0 : index
      %c0_18 = arith.constant 0 : index
      %21 = vector.load %arg5[%c0_17, %c0_18] : memref<512x256xf32, #tpu.memory_space<vmem>>, vector<512x256xf32>
      %cst_19 = arith.constant dense<0.000000e+00> : vector<2x256xf32>
      %22 = tpu.matmul %20, %21, %cst_19 {dimension_numbers = #tpu.dot_dimension_numbers<[1], [0], [0], [1], [0, 0, 1, 1], [], []>} : vector<2x512xf32>, vector<512x256xf32>, vector<2x256xf32> -> vector<2x256xf32>
      %c0_20 = arith.constant 0 : index
      %c0_21 = arith.constant 0 : index
      %23 = vector.load %arg6[%c0_20, %c0_21] : memref<1x256xf32, #tpu.memory_space<vmem>>, vector<1x256xf32>
      %24 = vector.broadcast %23 : vector<1x256xf32> to vector<2x256xf32>
      %25 = arith.addf %22, %24 : vector<2x256xf32>
      %cst_22 = arith.constant 0.000000e+00 : f32
      %26 = vector.broadcast %cst_22 : f32 to vector<2x256xf32>
      %27 = arith.maximumf %25, %26 : vector<2x256xf32>
      %c0_23 = arith.constant 0 : index
      %c0_24 = arith.constant 0 : index
      %28 = vector.load %arg7[%c0_23, %c0_24] : memref<1x256xf32, #tpu.memory_space<vmem>>, vector<1x256xf32>
      %29 = vector.broadcast %28 : vector<1x256xf32> to vector<2x256xf32>
      %30 = arith.mulf %27, %29 : vector<2x256xf32>
      %cst_25 = arith.constant dense<0.000000e+00> : vector<2xf32>
      %31 = vector.multi_reduction <add>, %30, %cst_25 [1] : vector<2x256xf32> to vector<2xf32>
      %32 = vector.shape_cast %31 : vector<2xf32> to vector<2x1xf32>
      %c0_26 = arith.constant 0 : index
      %c0_27 = arith.constant 0 : index
      %33 = vector.load %arg8[%c0_26, %c0_27] : memref<1x1xf32, #tpu.memory_space<vmem>>, vector<1x1xf32>
      %34 = vector.broadcast %33 : vector<1x1xf32> to vector<2x1xf32>
      %35 = arith.addf %32, %34 : vector<2x1xf32>
      %c0_28 = arith.constant 0 : index
      %c0_29 = arith.constant 0 : index
      %36 = vector.load %arg9[%c0_28, %c0_29] : memref<2x1xf32, #tpu.memory_space<vmem>>, vector<2x1xf32>
      tpu.vector_store %arg9[%c0_28, %c0_29], %35 {strides = array<i32>} : memref<2x1xf32, #tpu.memory_space<vmem>>, vector<2x1xf32>,
    } else {
    }
    return
  }
  func.func @transform_0(%arg0: i32, %arg1: i32) -> (i32, i32, i32) {
    %c0_i32 = arith.constant 0 : i32
    %c0_i32_0 = arith.constant 0 : i32
    return %arg0, %arg1, %c0_i32 : i32, i32, i32
  }
  func.func @transform_1(%arg0: i32, %arg1: i32) -> (i32, i32) {
    %c0_i32 = arith.constant 0 : i32
    %c0_i32_0 = arith.constant 0 : i32
    %c0_i32_1 = arith.constant 0 : i32
    return %c0_i32, %c0_i32_0 : i32, i32
  }
  func.func @transform_2(%arg0: i32, %arg1: i32) -> (i32, i32) {
    %c0_i32 = arith.constant 0 : i32
    %c0_i32_0 = arith.constant 0 : i32
    %c0_i32_1 = arith.constant 0 : i32
    return %c0_i32, %c0_i32_0 : i32, i32
  }
  func.func @transform_3(%arg0: i32, %arg1: i32) -> (i32, i32) {
    %c0_i32 = arith.constant 0 : i32
    %c0_i32_0 = arith.constant 0 : i32
    %c0_i32_1 = arith.constant 0 : i32
    return %c0_i32, %c0_i32_0 : i32, i32
  }
  func.func @transform_4(%arg0: i32, %arg1: i32) -> (i32, i32) {
    %c0_i32 = arith.constant 0 : i32
    %c0_i32_0 = arith.constant 0 : i32
    %c0_i32_1 = arith.constant 0 : i32
    return %c0_i32, %c0_i32_0 : i32, i32
  }
  func.func @transform_5(%arg0: i32, %arg1: i32) -> (i32, i32) {
    %c0_i32 = arith.constant 0 : i32
    %c0_i32_0 = arith.constant 0 : i32
    %c0_i32_1 = arith.constant 0 : i32
    return %c0_i32, %c0_i32_0 : i32, i32
  }
  func.func @transform_6(%arg0: i32, %arg1: i32) -> (i32, i32) {
    %c0_i32 = arith.constant 0 : i32
    %c0_i32_0 = arith.constant 0 : i32
    %c0_i32_1 = arith.constant 0 : i32
    return %c0_i32, %c0_i32_0 : i32, i32
  }
  func.func @transform_7(%arg0: i32, %arg1: i32) -> (i32, i32) {
    %c0_i32 = arith.constant 0 : i32
    %c0_i32_0 = arith.constant 0 : i32
    return %arg0, %c0_i32 : i32, i32
  }
}

</mosaic_0001>

<bundles_post_ra>
// kernel: tpu_custom_call.1
= control target key start
LH: loop header
LB: loop body
LE: loop exit
PB: predicated region body
PF: predicated region fallthrough
CT: control target
= control target key end

     0   :  { %s1622_s0 = inlined_call_operand.hbm [shape: f32[2,16,32], index: 0, kind: input, shape index: {}]   ;;  %s1623_s1 = inlined_call_operand.hbm [shape: f32[32,512], index: 1, kind: input, shape index: {}]   ;;  %s1624_s2 = inlined_call_operand.vmem [shape: f32[1,512], index: 2, kind: input, shape index: {}]   ;;  %s1625_s3 = inlined_call_operand.hbm [shape: f32[512,256], index: 3, kind: input, shape index: {}]   ;;  %s1626_s4 = inlined_call_operand.vmem [shape: f32[1,256], index: 4, kind: input, shape index: {}]   ;;  %s1627_s5 = inlined_call_operand.vmem [shape: f32[1,256], index: 5, kind: input, shape index: {}]   ;;  %s1628_s6 = inlined_call_operand.<no memory space> [shape: f32[1,1], index: 6, kind: input, shape index: {}]   ;;  %s1629_s7 = inlined_call_operand.vmem [shape: f32[2,1], index: 7, kind: output, shape index: {}]  }
   0x1   :  { %v12_v0 = vstv %s1628_s6 }
   0x2   :  { %13 = vst [vmem:[#allocation3] sm:$0x1] %v12_v0 }
   0x3   :  { %14 = vsyncpa [#allocation5], 0 }
   0x4   :  { %16 = vsyncpa [#allocation5 + $0x1], 0 }
   0x5   :  { %17 = vsyncpa [#allocation7], 0  ;;  %s1422_s26 = smov 0   ;;  %s1424_s27 = smov 0  }
   0x6   :  { %s1426_s28 = smov 0   ;;  %s1428_s29 = smov 0  }
   0x7   :  { %s1430_s30 = smov 0   ;;  %s1432_s8 = smov 0  }
   0x8 LB: > { %s975_s6 = sadd.s32 4294967295, %s1366_s8   ;;  %p51_p0 = scmp.ne.s32.totalorder %s1354_s28, %s1350_s27  ;;  %s1366_s8 = sphi %s1432_s8, %s23_s8   ;;  %s1362_s30 = sphi %s1430_s30, %s1648_s30   ;;  %s1358_s29 = sphi %s1428_s29, %s1647_s29   ;;  %s1354_s28 = sphi %s1426_s28, %s1646_s28   ;;  %s1350_s27 = sphi %s1424_s27, %s1645_s27   ;;  %s1346_s26 = sphi %s1422_s26, %s1644_s26  }
   0x9   : > { %p52_p1 = scmp.eq.s32.totalorder %s1366_s8, 0  ;;  %p57_p2 = scmp.ne.s32.totalorder %s1350_s27, %s1346_s26 }
   0xa   : > { %p1455_p3 = scmp.eq.s32.totalorder %s975_s6, 0  ;;  %p976_p4 = scmp.ge.s32.totalorder %s1366_s8, 1 }
   0xb   : > { %p53_p5 = por %p52_p1, %p51_p0  ;;  %p220_p6 = scmp.lt.s32.totalorder %s1366_s8, 3 }
   0xc   : > { %s1635_s9 = scalar_select %p1455_p3, 1, 0 }
   0xd   : > { %p1463_p7 = por %p1455_p3, %p57_p2  ;;  %p1467_p8 = pnand %p976_p4, %p220_p6 }
   0xe   : > { %s1368_s12 = smov [#allocation6]   ;;  %p1165_p11 = scmp.lt.s32.totalorder %s1366_s8, 2 }
   0xf   : > { %s1636_s10 = scalar_select %p1463_p7, 1, 0 }
  0x10   : > { %s1637_s11 = scalar_select %p1467_p8, 1, 0 }
  0x11   : > { %s232_s13 = sshll.u32 %s1368_s12, 4  ;;  %p1152_p9 = pneg %p1467_p8  ;;  %s233_s13 = int_to_ptr.vmem [resolvable:$true] %s232_s13 }
  0x12   : > { %p1480_p12 = pnand %p1165_p11, %p53_p5  ;;  %s1226_s18 = scalar_lea.hbm %s1623_s1, 2048 }
  0x13   : > { %p1475_p10 = pnand %p1152_p9, %p1455_p3  ;;  %p1227_p13 = scmp.ne.s32.totalorder %s1623_s1, %s1226_s18 }
  0x14   : > { %s1639_s15 = scalar_select %p1480_p12, 1, 0 }
  0x15   : > { %p1228_p0 = pneg %p1475_p10  ;;  %p1233_p4 = scmp.lt.u32.totalorder %s1226_s18, %s1623_s1 }
  0x17   : > { %p1229_p1 = pnand %p1228_p0, %p1227_p13 }
  0x19   : > { %p1230_p2 = pneg %p1229_p1 }
  0x1b   : > { %p1235_p5 = pnand %p1233_p4, %p1230_p2 }
  0x1d   : > { %1238 = shalt.err (!%p1235_p5)
}
  0x1e   : > { %s1239_s23 = scalar_lea.vmem %s233_s13, 2048  ;;  %p1247_p3 = scmp.lt.s32.totalorder %s233_s13, %s233_s13 }
  0x1f   : > { %p1240_p6 = scmp.ne.s32.totalorder %s233_s13, %s1239_s23  ;;  %p1248_p7 = scmp.lt.s32.totalorder %s1239_s23, %s1239_s23 }
  0x21   : > { %p1242_p9 = pnand %p1240_p6, %p1228_p0  ;;  %p1249_p8 = por %p1248_p7, %p1247_p3 }
  0x23   : > { %p1243_p11 = pneg %p1242_p9 }
  0x25   : > { %p1250_p12 = pnand %p1249_p8, %p1243_p11 }
  0x27   : > { %1253 = shalt.err (!%p1250_p12)
}
  0x28   : > { %s1369_s24 = smov 512   ;;  %s1370_s25 = smov 32  }
  0x29   : > { %1155 = dma.hbm_to_vmem [thread:$0]  (!%p1475_p10), %s1623_s1, 2048, %s233_s13, [#allocation7], %s1369_s24, %s1369_s24, %s1370_s25  }
  0x2a   : > { %s1371_s12 = smov [#allocation8]   ;;  %s1254_s19 = scalar_lea.hbm %s1625_s3, 16384 }
  0x2b   : > { %s248_s16 = sshll.u32 %s1371_s12, 4  ;;  %p1255_p3 = scmp.ne.s32.totalorder %s1625_s3, %s1254_s19  ;;  %s249_s16 = int_to_ptr.vmem [resolvable:$true] %s248_s16 }
  0x2c   : > { %p1261_p12 = scmp.lt.u32.totalorder %s1254_s19, %s1625_s3 }
  0x2d   : > { %p1257_p7 = pnand %p1255_p3, %p1228_p0 }
  0x2f   : > { %p1258_p8 = pneg %p1257_p7 }
  0x31   : > { %p1263_p13 = pnand %p1261_p12, %p1258_p8 }
  0x33   : > { %1266 = shalt.err (!%p1263_p13)
}
  0x34   : > { %s1267_s13 = scalar_lea.vmem %s249_s16, 16384  ;;  %p1275_p5 = scmp.lt.s32.totalorder %s249_s16, %s249_s16 }
  0x35   : > { %p1268_p1 = scmp.ne.s32.totalorder %s249_s16, %s1267_s13  ;;  %p1276_p6 = scmp.lt.s32.totalorder %s1267_s13, %s1267_s13 }
  0x37   : > { %p1270_p2 = pnand %p1268_p1, %p1228_p0  ;;  %p1277_p9 = por %p1276_p6, %p1275_p5 }
  0x39   : > { %p1271_p4 = pneg %p1270_p2 }
  0x3b   : > { %p1278_p11 = pnand %p1277_p9, %p1271_p4 }
  0x3d   : > { %1281 = shalt.err (!%p1278_p11)
}
  0x3e   : > { %s1372_s24 = smov 256   ;;  %s1373_s25 = smov 16  }
  0x3f   : > { %1158 = dma.hbm_to_vmem [thread:$0]  (!%p1475_p10), %s1625_s3, 16384, %s249_s16, [#allocation7], %s1372_s24, %s1372_s24, %s1373_s25  }
  0x40   : > { %s44_s12 = sadd.s32 1, %s1354_s28  ;;  %s271_s17 = sand.u32 1, %s1354_s28  }
  0x41   : > { %s32_s18 = sadd.s32 1, %s1362_s30  ;;  %s980_s19 = sshll.u32 %s271_s17, 4 }
  0x42   : > { %p33_p0 = scmp.ge.s32.totalorder %s32_s18, 2  ;;  %s981_s20 = sshll.u32 %s1362_s30, 7 }
  0x43   : > { %s1537_s14 = scalar_lea.hbm %s1622_s0, %s981_s20  ;;  %s275_s16 = scalar_lea.vmem [#allocation4], %s980_s19 }
  0x44   : > { %s1650_s18 = smov (%p33_p0, %s32_s18), 0  ;;  %s284_s23 = sshll.u32 %s275_s16, 4  ;;  %s1541_s23 = int_to_ptr.vmem [resolvable:$true] %s284_s23 }
  0x45   : > { %s40_s13 = ssub.s32 %s1362_s30, %s1650_s18  ;;  %s1546_s26 = scalar_lea.sflag [#allocation5], %s271_s17 }
  0x46   : > { %p42_p10 = scmp.eq.s32.totalorder %s40_s13, 0  ;;  %s1282_s6 = scalar_lea.hbm %s1537_s14, 256 }
  0x47   : > { %p1283_p3 = scmp.ne.s32.totalorder %s1537_s14, %s1282_s6  ;;  %p1640_p7 = scmp.ne.s32.totalorder %s1639_s15, 0 }
  0x48   : > { %s1544_s25 = scalar_select %p42_p10, %s1354_s28, %s44_s12  }
  0x49   : > { %p1284_p8 = pneg %p1640_p7  ;;  %s1287_s21 = scalar_lea.hbm %s1622_s0, 512 }
  0x4a   : > { %p1288_p1 = scmp.lt.u32.totalorder %s1537_s14, %s1622_s0  ;;  %p1289_p2 = scmp.lt.u32.totalorder %s1287_s21, %s1282_s6 }
  0x4b   : > { %p1285_p12 = pnand %p1284_p8, %p1283_p3  ;;  %p1291_p5 = scmp.lt.u32.totalorder %s1282_s6, %s1537_s14 }
  0x4c   : > { %p1290_p4 = por %p1289_p2, %p1288_p1 }
  0x4d   : > { %p1286_p13 = pneg %p1285_p12 }
  0x4e   : > { %p1292_p6 = por %p1291_p5, %p1290_p4 }
  0x50   : > { %p1293_p9 = pnand %p1292_p6, %p1286_p13 }
  0x52   : > { %1296 = shalt.err (!%p1293_p9)
}
  0x53   : > { %s1297_s12 = scalar_lea.vmem %s1541_s23, 256  ;;  %s1374_s17 = smov [#allocation4]  }
  0x54   : > { %p1298_p11 = scmp.ne.s32.totalorder %s1541_s23, %s1297_s12  ;;  %s1302_s13 = sshll.u32 %s1374_s17, 4  ;;  %s1303_s13 = int_to_ptr.vmem [resolvable:$false] %s1302_s13 }
  0x55   : > { %s1304_s20 = scalar_lea.vmem %s1303_s13, 512  ;;  %p1305_p3 = scmp.lt.s32.totalorder %s1541_s23, %s1303_s13 }
  0x56   : > { %p1300_p0 = pnand %p1298_p11, %p1284_p8  ;;  %p1306_p12 = scmp.lt.s32.totalorder %s1304_s20, %s1297_s12 }
  0x58   : > { %p1301_p10 = pneg %p1300_p0  ;;  %p1307_p1 = por %p1306_p12, %p1305_p3 }
  0x5a   : > { %p1308_p2 = pnand %p1307_p1, %p1301_p10 }
  0x5c   : > { %1311 = shalt.err (!%p1308_p2)
}
  0x5d   : > { %s1375_s6 = smov 128   ;;  %s1376_s19 = smov 8  }
  0x5e   : > { %1162 = dma.hbm_to_vmem [thread:$0]  (!%p1640_p7), %s1537_s14, 256, %s1541_s23, %s1546_s26, %s1372_s24, %s1375_s6, %s1376_s19  }
  0x5f   : > { %p1641_p8 = scmp.ne.s32.totalorder %s1637_s11, 0 }
  0x60   : > { %s298_s21 = sand.u32 (!%p1641_p8), 1, %s1350_s27   ;;  %p1642_p13 = scmp.ne.s32.totalorder (!%p1641_p8), %s1636_s10, 0 }
  0x61   : > { %296 = sbr.rel (%p1641_p8) target bundleno = 731 (0x2db), region = 48  ;;  %s983_s22 = sshll.u32 (!%p1641_p8), %s298_s21, 4 }
  0x62   : > { %s299_s16 = scalar_lea.sflag (!%p1641_p8), [#allocation5], %s298_s21  ;;  %s302_s12 = scalar_lea.vmem (!%p1641_p8), [#allocation4], %s983_s22 }
  0x68   : > { %1337 = dma.done.wait (%p1642_p13), %s299_s16, 256  }
  0x69   : > { %1339 = vsyncadd (%p1642_p13), %s299_s16, 4294967040  ;;  %p1643_p4 = scmp.ne.s32.totalorder %s1635_s9, 0 }
  0x6b   : > { %1341 = dma.done.wait (%p1643_p4), [#allocation7], 18432  }
  0x6c   : > { %1343 = vsyncadd (%p1643_p4), [#allocation7], 4294948864  ;;  %p986_p7 = scmp.ne.s32.totalorder %s1358_s29, 0 }
  0x6d   : > { %vm349_vm0 = vcmask (!%p986_p7), 254976   ;;  %v1377_v1 = vmov (!%p986_p7), 0.0  }
  0x6e   : > { %348 = sbr.rel (%p986_p7) target bundleno = 117 (0x75), region = 64  ;;  %350 = vst.msk [vmem:[#allocation2] sm:$0x3] (!%p986_p7), %vm349_vm0, %v1377_v1 }
  0x75 PF: > { %v351_v2 = vld [vmem:[%s302_s12] sm:$0xff]  ;;  %v352_v3 = vld [vmem:[%s302_s12 + $0x8] sm:$0xff]  ;;  %vm354_vm1 = vcmask 261120   ;;  %vm371_vm2 = vcmask 1041409   ;;  %vm375_vm3 = vcmask 254976   ;;  %p987_p5 = scmp.ne.s32.totalorder %s1358_s29, 1 }
  0x76   : > { %v355_v4 = vsel %vm354_vm1, %v351_v2, 0.0  ;;  %v362_v5 = vsel %vm354_vm1, %v352_v3, 0.0  ;;  %v353_v16 = vld [vmem:[#allocation2] sm:$0x3]  ;;  %v384_v21 = vld [vmem:[#allocation6 + $0x8] sm:$0xff] (!%p987_p5)  ;;  %v383_v26 = vld [vmem:[#allocation6] sm:$0xff] (!%p987_p5) }
  0x77   : > { %v356_v6 = vrot.slane %v355_v4, 4  ;;  %v363_v7 = vrot.slane %v362_v5, 4  ;;  %v388_v22 = vld [vmem:[#allocation6 + $0x28] sm:$0xff] (!%p987_p5)  ;;  %v386_v23 = vld [vmem:[#allocation6 + $0x18] sm:$0xff] (!%p987_p5)  ;;  %v387_v27 = vld [vmem:[#allocation6 + $0x20] sm:$0xff] (!%p987_p5)  ;;  %v1378_v28 = vmov (!%p987_p5), 0.0  }
  0x78   : > { %v994_v24 = vpack.c.bf16 (!%p987_p5), %v388_v22, %v384_v21  ;;  %v390_v25 = vld [vmem:[#allocation6 + $0x38] sm:$0xff] (!%p987_p5)  ;;  %488 = vmatprep.mubr.f32.mxu0 (!%p987_p5), %v1378_v28  ;;  %559 = vmatprep.mubr.f32.mxu1 (!%p987_p5), %v1378_v28  ;;  %v996_v30 = vpack.c.bf16 (!%p987_p5), %v387_v27, %v383_v26  ;;  %v385_v31 = vld [vmem:[#allocation6 + $0x10] sm:$0xff] (!%p987_p5)  ;;  %v392_v33 = vld [vmem:[#allocation6 + $0x48] sm:$0xff] (!%p987_p5)  ;;  %vm868_vm4 = vcmask (!%p987_p5), 1041408   ;;  %vm882_vm5 = vcmask (!%p987_p5), 1024  }
  0x79   : > { %v357_v8 = vadd.f32 %v356_v6, %v355_v4  ;;  %v364_v9 = vadd.f32 %v363_v7, %v362_v5  ;;  %v1002_v29 = vpack.c.bf16 (!%p987_p5), %v390_v25, %v386_v23  ;;  %v389_v32 = vld [vmem:[#allocation6 + $0x30] sm:$0xff] (!%p987_p5)  ;;  %v396_v35 = vld [vmem:[#allocation6 + $0x68] sm:$0xff] (!%p987_p5)  ;;  %v394_v36 = vld [vmem:[#allocation6 + $0x58] sm:$0xff] (!%p987_p5) }
  0x7a   : > { %995 = vmatprep.subr.bf16.mxu0 (!%p987_p5), %v994_v24  ;;  %v1004_v34 = vpack.c.bf16 (!%p987_p5), %v389_v32, %v385_v31  ;;  %v398_v37 = vld [vmem:[#allocation6 + $0x78] sm:$0xff] (!%p987_p5)  ;;  %v998_v38 = vpack.c.bf16 (!%p987_p5), %v396_v35, %v392_v33  ;;  %v391_v40 = vld [vmem:[#allocation6 + $0x40] sm:$0xff] (!%p987_p5)  ;;  %v393_v42 = vld [vmem:[#allocation6 + $0x50] sm:$0xff] (!%p987_p5) }
  0x7b   : > { %v358_v10 = vrot.slane %v357_v8, 2  ;;  %v365_v11 = vrot.slane %v364_v9, 2  ;;  %1003 = vmatprep.subr.bf16.mxu1 (!%p987_p5), %v1002_v29  ;;  %997 = vmatpush1.bf16.msra.mxu0 (!%p987_p5), %v996_v30  ;;  %v1006_v39 = vpack.c.bf16 (!%p987_p5), %v398_v37, %v394_v36  ;;  %v395_v41 = vld [vmem:[#allocation6 + $0x60] sm:$0xff] (!%p987_p5)  ;;  %v397_v44 = vld [vmem:[#allocation6 + $0x70] sm:$0xff] (!%p987_p5)  ;;  %v571_v46 = vld [vmem:[#allocation8 + $0x8] sm:$0xff] (!%p987_p5) }
  0x7c   : > { %1005 = vmatpush1.bf16.msra.mxu1 (!%p987_p5), %v1004_v34  ;;  %v1000_v43 = vpack.c.bf16 (!%p987_p5), %v395_v41, %v391_v40  ;;  %999 = vmatprep.subr.bf16.mxu0 (!%p987_p5), %v998_v38  ;;  %v1008_v47 = vpack.c.bf16 (!%p987_p5), %v397_v44, %v393_v42  ;;  %v573_v48 = vld [vmem:[#allocation8 + $0x18] sm:$0xff] (!%p987_p5)  ;;  %v635_v49 = vld [vmem:[#allocation8 + $0x208] sm:$0xff] (!%p987_p5)  ;;  %v570_v54 = vld [vmem:[#allocation8] sm:$0xff] (!%p987_p5) }
  0x7d   : > { %v359_v12 = vadd.f32 %v358_v10, %v357_v8  ;;  %v366_v13 = vadd.f32 %v365_v11, %v364_v9  ;;  %1007 = vmatprep.subr.bf16.mxu1 (!%p987_p5), %v1006_v39  ;;  %v637_v50 = vld [vmem:[#allocation8 + $0x218] sm:$0xff] (!%p987_p5)  ;;  %v1010_v52 = vpack.c.bf16 (!%p987_p5), %v573_v48, %v571_v46  ;;  %v572_v55 = vld [vmem:[#allocation8 + $0x10] sm:$0xff] (!%p987_p5)  ;;  %v634_v56 = vld [vmem:[#allocation8 + $0x200] sm:$0xff] (!%p987_p5) }
  0x7e   : > { %v1074_v53 = vpack.c.bf16 (!%p987_p5), %v637_v50, %v635_v49  ;;  %v636_v57 = vld [vmem:[#allocation8 + $0x210] sm:$0xff] (!%p987_p5)  ;;  %v575_v58 = vld [vmem:[#allocation8 + $0x28] sm:$0xff] (!%p987_p5)  ;;  %v577_v59 = vld [vmem:[#allocation8 + $0x38] sm:$0xff] (!%p987_p5)  ;;  %v1012_v60 = vpack.c.bf16 (!%p987_p5), %v572_v55, %v570_v54 }
  0x7f   : > { %v360_v14 = vrot.slane %v359_v12, 1  ;;  %v367_v15 = vrot.slane %v366_v13, 1  ;;  %1001 = vmatpush1.bf16.msra.mxu0 (!%p987_p5), %v1000_v43  ;;  %v1076_v61 = vpack.c.bf16 (!%p987_p5), %v636_v57, %v634_v56  ;;  %v639_v62 = vld [vmem:[#allocation8 + $0x228] sm:$0xff] (!%p987_p5)  ;;  %v641_v63 = vld [vmem:[#allocation8 + $0x238] sm:$0xff] (!%p987_p5)  ;;  %v574_v0 = vld [vmem:[#allocation8 + $0x20] sm:$0xff] (!%p987_p5)  ;;  %v1014_v1 = vpack.c.bf16 (!%p987_p5), %v577_v59, %v575_v58 }
  0x80   : > { %380 = sbr.rel (%p987_p5) target bundleno = 731 (0x2db), region = 68  ;;  %1009 = vmatpush1.bf16.msra.mxu1 (!%p987_p5), %v1008_v47  ;;  %1075 = vmatprep.subr.bf16.mxu0 (!%p987_p5), %v1074_v53  ;;  %v1078_v2 = vpack.c.bf16 (!%p987_p5), %v641_v63, %v639_v62  ;;  %v576_v3 = vld [vmem:[#allocation8 + $0x30] sm:$0xff] (!%p987_p5)  ;;  %v638_v4 = vld [vmem:[#allocation8 + $0x220] sm:$0xff] (!%p987_p5)  ;;  %v579_v6 = vld [vmem:[#allocation8 + $0x48] sm:$0xff] (!%p987_p5) }
  0x81   : > { %v361_v17 = vadd.f32 %v360_v14, %v359_v12  ;;  %v368_v18 = vadd.f32 %v367_v15, %v366_v13  ;;  %1011 = vmatprep.subr.bf16.mxu1 (!%p987_p5), %v1010_v52  ;;  %v640_v5 = vld [vmem:[#allocation8 + $0x230] sm:$0xff] (!%p987_p5)  ;;  %v581_v7 = vld [vmem:[#allocation8 + $0x58] sm:$0xff] (!%p987_p5)  ;;  %v643_v8 = vld [vmem:[#allocation8 + $0x248] sm:$0xff] (!%p987_p5)  ;;  %v1016_v11 = vpack.c.bf16 (!%p987_p5), %v576_v3, %v574_v0 }
  0x82   : > { %v1080_v9 = vpack.c.bf16 (!%p987_p5), %v640_v5, %v638_v4  ;;  %v645_v10 = vld [vmem:[#allocation8 + $0x258] sm:$0xff] (!%p987_p5)  ;;  %v578_v13 = vld [vmem:[#allocation8 + $0x40] sm:$0xff] (!%p987_p5)  ;;  %v644_v15 = vld [vmem:[#allocation8 + $0x250] sm:$0xff] (!%p987_p5) }
  0x83   : > { %v372_v19 = vsel %vm371_vm2, %v368_v18, %v361_v17  ;;  %v1082_v12 = vpack.c.bf16 (!%p987_p5), %v645_v10, %v643_v8  ;;  %v642_v14 = vld [vmem:[#allocation8 + $0x240] sm:$0xff] (!%p987_p5)  ;;  %v580_v17 = vld [vmem:[#allocation8 + $0x50] sm:$0xff] (!%p987_p5)  ;;  %v647_v18 = vld [vmem:[#allocation8 + $0x268] sm:$0xff] (!%p987_p5) }
  0x84   : > { %v374_v20 = vadd.f32 %v372_v19, %v353_v16  ;;  %v1018_v16 = vpack.c.bf16 (!%p987_p5), %v581_v7, %v579_v6  ;;  %v649_v19 = vld [vmem:[#allocation8 + $0x278] sm:$0xff] (!%p987_p5)  ;;  %v1084_v22 = vpack.c.bf16 (!%p987_p5), %v644_v15, %v642_v14  ;;  %v1020_v23 = vpack.c.bf16 (!%p987_p5), %v580_v17, %v578_v13  ;;  %v582_v25 = vld [vmem:[#allocation8 + $0x60] sm:$0xff] (!%p987_p5)  ;;  %v648_v27 = vld [vmem:[#allocation8 + $0x270] sm:$0xff] (!%p987_p5) }
  0x85   : > { %v585_v21 = vld [vmem:[#allocation8 + $0x78] sm:$0xff] (!%p987_p5)  ;;  %v1086_v24 = vpack.c.bf16 (!%p987_p5), %v649_v19, %v647_v18  ;;  %v646_v26 = vld [vmem:[#allocation8 + $0x260] sm:$0xff] (!%p987_p5)  ;;  %v584_v29 = vld [vmem:[#allocation8 + $0x70] sm:$0xff] (!%p987_p5) }
  0x86   : > { %376 = vst.msk [vmem:[#allocation2] sm:$0x3] %vm375_vm3, %v374_v20  ;;  %v583_v20 = vld [vmem:[#allocation8 + $0x68] sm:$0xff] (!%p987_p5)  ;;  %v653_v31 = vld [vmem:[#allocation8 + $0x298] sm:$0xff] (!%p987_p5)  ;;  %v1088_v34 = vpack.c.bf16 (!%p987_p5), %v648_v27, %v646_v26  ;;  %v1024_v35 = vpack.c.bf16 (!%p987_p5), %v584_v29, %v582_v25  ;;  %v586_v37 = vld [vmem:[#allocation8 + $0x80] sm:$0xff] (!%p987_p5) }
  0x87   : > { %v1022_v28 = vpack.c.bf16 %v585_v21, %v583_v20  ;;  %v651_v30 = vld [vmem:[#allocation8 + $0x288] sm:$0xff]  ;;  %v589_v33 = vld [vmem:[#allocation8 + $0x98] sm:$0xff]  ;;  %v650_v38 = vld [vmem:[#allocation8 + $0x280] sm:$0xff] }
  0x88   : > { %v587_v32 = vld [vmem:[#allocation8 + $0x88] sm:$0xff]  ;;  %v1090_v36 = vpack.c.bf16 %v653_v31, %v651_v30  ;;  %v652_v39 = vld [vmem:[#allocation8 + $0x290] sm:$0xff]  ;;  %v657_v43 = vld [vmem:[#allocation8 + $0x2b8] sm:$0xff] }
  0x89   : > { %v1026_v40 = vpack.c.bf16 %v589_v33, %v587_v32  ;;  %v588_v41 = vld [vmem:[#allocation8 + $0x90] sm:$0xff]  ;;  %v655_v42 = vld [vmem:[#allocation8 + $0x2a8] sm:$0xff]  ;;  %v1092_v46 = vpack.c.bf16 %v652_v39, %v650_v38  ;;  %v590_v49 = vld [vmem:[#allocation8 + $0xa0] sm:$0xff] }
  0x8a   : > { %v591_v44 = vld [vmem:[#allocation8 + $0xa8] sm:$0xff]  ;;  %v1028_v47 = vpack.c.bf16 %v588_v41, %v586_v37  ;;  %v1094_v48 = vpack.c.bf16 %v657_v43, %v655_v42  ;;  %v654_v50 = vld [vmem:[#allocation8 + $0x2a0] sm:$0xff]  ;;  %v592_v53 = vld [vmem:[#allocation8 + $0xb0] sm:$0xff] }
  0x8b   : > { %v659_v54 = vld [vmem:[#allocation8 + $0x2c8] sm:$0xff]  ;;  %v661_v55 = vld [vmem:[#allocation8 + $0x2d8] sm:$0xff]  ;;  %v1032_v59 = vpack.c.bf16 %v592_v53, %v590_v49  ;;  %v658_v62 = vld [vmem:[#allocation8 + $0x2c0] sm:$0xff] }
  0x8c   : > { %v595_v56 = vld [vmem:[#allocation8 + $0xc8] sm:$0xff]  ;;  %v597_v57 = vld [vmem:[#allocation8 + $0xd8] sm:$0xff]  ;;  %v660_v63 = vld [vmem:[#allocation8 + $0x2d0] sm:$0xff] }
  0x8d   : > { %v381_v45 = vld [vmem:[#allocation2] sm:$0x3]  ;;  %v1034_v0 = vpack.c.bf16 %v597_v57, %v595_v56  ;;  %v599_v4 = vld [vmem:[#allocation8 + $0xe8] sm:$0xff]  ;;  %v1100_v6 = vpack.c.bf16 %v660_v63, %v658_v62  ;;  %v662_v10 = vld [vmem:[#allocation8 + $0x2e0] sm:$0xff] }
  0x8e   : > { %v382_v51 = vmul.f32 0.0625, %v381_v45  ;;  %v593_v45 = vld [vmem:[#allocation8 + $0xb8] sm:$0xff]  ;;  %v600_v13 = vld [vmem:[#allocation8 + $0xf0] sm:$0xff]  ;;  %v667_v14 = vld [vmem:[#allocation8 + $0x308] sm:$0xff] }
  0x8f   : > { %v1030_v52 = vpack.c.bf16 %v593_v45, %v591_v44  ;;  %v665_v3 = vld [vmem:[#allocation8 + $0x2f8] sm:$0xff]  ;;  %v602_v21 = vld [vmem:[#allocation8 + $0x100] sm:$0xff]  ;;  %v604_v25 = vld [vmem:[#allocation8 + $0x110] sm:$0xff] }
  0x90   : > { %988 = vmatmul.mubr.msk.f32.vlgmr.msra.gmra.mrb[0].mxu0 %vm354_vm1, %v382_v51  ;;  %989 = vmatmul.mubr.msk.f32.vlgmr.msra.gmra.mrb[0].mxu1 %vm354_vm1, %v382_v51  ;;  %v656_v51 = vld [vmem:[#allocation8 + $0x2b0] sm:$0xff]  ;;  %v601_v5 = vld [vmem:[#allocation8 + $0xf8] sm:$0xff]  ;;  %v671_v26 = vld [vmem:[#allocation8 + $0x328] sm:$0xff]  ;;  %v1044_v31 = vpack.c.bf16 %v604_v25, %v602_v21 }
  0x91   : > { %1077 = vmatpush1.bf16.msra.mxu0 %v1076_v61  ;;  %1013 = vmatpush1.bf16.msra.mxu1 %v1012_v60  ;;  %v1096_v58 = vpack.c.bf16 %v656_v51, %v654_v50  ;;  %v1098_v60 = vpack.c.bf16 %v661_v55, %v659_v54  ;;  %v594_v61 = vld [vmem:[#allocation8 + $0xc0] sm:$0xff]  ;;  %v669_v15 = vld [vmem:[#allocation8 + $0x318] sm:$0xff]  ;;  %v608_v37 = vld [vmem:[#allocation8 + $0x130] sm:$0xff] }
  0x92   : > { %1079 = vmatprep.subr.bf16.mxu0 %v1078_v2  ;;  %1015 = vmatprep.subr.bf16.mxu1 %v1014_v1  ;;  %v596_v1 = vld [vmem:[#allocation8 + $0xd0] sm:$0xff]  ;;  %v663_v2 = vld [vmem:[#allocation8 + $0x2e8] sm:$0xff]  ;;  %v605_v17 = vld [vmem:[#allocation8 + $0x118] sm:$0xff]  ;;  %v1106_v20 = vpack.c.bf16 %v669_v15, %v667_v14 }
  0x93   : > { %v1036_v7 = vpack.c.bf16 %v596_v1, %v594_v61  ;;  %v1102_v8 = vpack.c.bf16 %v665_v3, %v663_v2  ;;  %v673_v27 = vld [vmem:[#allocation8 + $0x338] sm:$0xff]  ;;  %v606_v33 = vld [vmem:[#allocation8 + $0x120] sm:$0xff]  ;;  %v675_v38 = vld [vmem:[#allocation8 + $0x348] sm:$0xff] }
  0x94   : > { %v609_v29 = vld [vmem:[#allocation8 + $0x138] sm:$0xff]  ;;  %v1110_v32 = vpack.c.bf16 %v673_v27, %v671_v26  ;;  %v1048_v43 = vpack.c.bf16 %v608_v37, %v606_v33  ;;  %v610_v45 = vld [vmem:[#allocation8 + $0x140] sm:$0xff]  ;;  %v612_v49 = vld [vmem:[#allocation8 + $0x150] sm:$0xff] }
  0x95   : > { %1081 = vmatpush1.bf16.msra.mxu0 %v1080_v9  ;;  %1017 = vmatpush1.bf16.msra.mxu1 %v1016_v11  ;;  %v598_v9 = vld [vmem:[#allocation8 + $0xe0] sm:$0xff]  ;;  %v664_v11 = vld [vmem:[#allocation8 + $0x2f0] sm:$0xff]  ;;  %v677_v39 = vld [vmem:[#allocation8 + $0x358] sm:$0xff]  ;;  %v1052_v55 = vpack.c.bf16 %v612_v49, %v610_v45 }
  0x96   : > { %1083 = vmatprep.subr.bf16.mxu0 %v1082_v12  ;;  %1019 = vmatprep.subr.bf16.mxu1 %v1018_v16  ;;  %v1038_v12 = vpack.c.bf16 %v601_v5, %v599_v4  ;;  %v603_v16 = vld [vmem:[#allocation8 + $0x108] sm:$0xff]  ;;  %v1104_v18 = vpack.c.bf16 %v664_v11, %v662_v10  ;;  %v1040_v19 = vpack.c.bf16 %v600_v13, %v598_v9  ;;  %v613_v41 = vld [vmem:[#allocation8 + $0x158] sm:$0xff]  ;;  %v614_v57 = vld [vmem:[#allocation8 + $0x160] sm:$0xff] }
  0x97   : > { %v1114_v44 = vpack.c.bf16 %v677_v39, %v675_v38  ;;  %v679_v50 = vld [vmem:[#allocation8 + $0x368] sm:$0xff]  ;;  %v681_v51 = vld [vmem:[#allocation8 + $0x378] sm:$0xff]  ;;  %v616_v61 = vld [vmem:[#allocation8 + $0x170] sm:$0xff] }
  0x98   : > { %v617_v53 = vld [vmem:[#allocation8 + $0x178] sm:$0xff]  ;;  %v1118_v56 = vpack.c.bf16 %v681_v51, %v679_v50  ;;  %v683_v62 = vld [vmem:[#allocation8 + $0x388] sm:$0xff]  ;;  %v1056_v3 = vpack.c.bf16 %v616_v61, %v614_v57  ;;  %v618_v5 = vld [vmem:[#allocation8 + $0x180] sm:$0xff] }
  0x99   : > { %1085 = vmatpush1.bf16.msra.mxu0 %v1084_v22  ;;  %1021 = vmatpush1.bf16.msra.mxu1 %v1020_v23  ;;  %v666_v22 = vld [vmem:[#allocation8 + $0x300] sm:$0xff]  ;;  %v668_v23 = vld [vmem:[#allocation8 + $0x310] sm:$0xff]  ;;  %v685_v63 = vld [vmem:[#allocation8 + $0x398] sm:$0xff] }
  0x9a   : > { %1087 = vmatprep.subr.bf16.mxu0 %v1086_v24  ;;  %1023 = vmatprep.subr.bf16.mxu1 %v1022_v28  ;;  %v1042_v24 = vpack.c.bf16 %v605_v17, %v603_v16  ;;  %v607_v28 = vld [vmem:[#allocation8 + $0x128] sm:$0xff]  ;;  %v1108_v30 = vpack.c.bf16 %v668_v23, %v666_v22  ;;  %v621_v1 = vld [vmem:[#allocation8 + $0x198] sm:$0xff]  ;;  %v1122_v4 = vpack.c.bf16 %v685_v63, %v683_v62  ;;  %v620_v9 = vld [vmem:[#allocation8 + $0x190] sm:$0xff] }
  0x9b   : > { %v687_v10 = vld [vmem:[#allocation8 + $0x3a8] sm:$0xff]  ;;  %v689_v11 = vld [vmem:[#allocation8 + $0x3b8] sm:$0xff]  ;;  %v1060_v15 = vpack.c.bf16 %v620_v9, %v618_v5  ;;  %v622_v17 = vld [vmem:[#allocation8 + $0x1a0] sm:$0xff] }
  0x9c   : > { %v625_v13 = vld [vmem:[#allocation8 + $0x1b8] sm:$0xff]  ;;  %v1126_v16 = vpack.c.bf16 %v689_v11, %v687_v10  ;;  %v624_v21 = vld [vmem:[#allocation8 + $0x1b0] sm:$0xff]  ;;  %v691_v22 = vld [vmem:[#allocation8 + $0x3c8] sm:$0xff] }
  0x9d   : > { %1089 = vmatpush1.bf16.msra.mxu0 %v1088_v34  ;;  %1025 = vmatpush1.bf16.msra.mxu1 %v1024_v35  ;;  %v670_v34 = vld [vmem:[#allocation8 + $0x320] sm:$0xff]  ;;  %v672_v35 = vld [vmem:[#allocation8 + $0x330] sm:$0xff]  ;;  %v693_v23 = vld [vmem:[#allocation8 + $0x3d8] sm:$0xff]  ;;  %v1064_v27 = vpack.c.bf16 %v624_v21, %v622_v17 }
  0x9e   : > { %1091 = vmatprep.subr.bf16.mxu0 %v1090_v36  ;;  %1027 = vmatprep.subr.bf16.mxu1 %v1026_v40  ;;  %v1046_v36 = vpack.c.bf16 %v609_v29, %v607_v28  ;;  %v611_v40 = vld [vmem:[#allocation8 + $0x148] sm:$0xff]  ;;  %v1112_v42 = vpack.c.bf16 %v672_v35, %v670_v34  ;;  %v629_v25 = vld [vmem:[#allocation8 + $0x1d8] sm:$0xff]  ;;  %v1130_v28 = vpack.c.bf16 %v693_v23, %v691_v22  ;;  %v692_v34 = vld [vmem:[#allocation8 + $0x3d0] sm:$0xff] }
  0x9f   : > { %v633_v37 = vld [vmem:[#allocation8 + $0x1f8] sm:$0xff]  ;;  %v695_v38 = vld [vmem:[#allocation8 + $0x3e8] sm:$0xff]  ;;  %v694_v45 = vld [vmem:[#allocation8 + $0x3e0] sm:$0xff] }
  0xa0   : > { %v399_v51 = vld [vmem:[%s1624_s2] sm:$0xf] }
  0xa1   : > { %1093 = vmatpush1.bf16.msra.mxu0 %v1092_v46  ;;  %1029 = vmatpush1.bf16.msra.mxu1 %v1028_v47  ;;  %v674_v46 = vld [vmem:[#allocation8 + $0x340] sm:$0xff]  ;;  %v676_v47 = vld [vmem:[#allocation8 + $0x350] sm:$0xff]  ;;  %v854_v11 = vld [vmem:[%s1627_s5] sm:$0x3] }
  0xa2   : > { %1095 = vmatprep.subr.bf16.mxu0 %v1094_v48  ;;  %1031 = vmatprep.subr.bf16.mxu1 %v1030_v52  ;;  %v1050_v48 = vpack.c.bf16 %v613_v41, %v611_v40  ;;  %v615_v52 = vld [vmem:[#allocation8 + $0x168] sm:$0xff]  ;;  %v1116_v54 = vpack.c.bf16 %v676_v47, %v674_v46  ;;  %v697_v40 = vld [vmem:[#allocation8 + $0x3f8] sm:$0xff]  ;;  %v630_v41 = vld [vmem:[#allocation8 + $0x1e0] sm:$0xff] }
  0xa3   : > { %v696_v46 = vld [vmem:[#allocation8 + $0x3f0] sm:$0xff] }
  0xa4   : > { %v1136_v47 = vpack.c.bf16 %v696_v46, %v694_v45 }
  0xa5   : > { %1097 = vmatpush1.bf16.msra.mxu0 %v1096_v58  ;;  %1033 = vmatpush1.bf16.msra.mxu1 %v1032_v59  ;;  %v678_v58 = vld [vmem:[#allocation8 + $0x360] sm:$0xff]  ;;  %v680_v59 = vld [vmem:[#allocation8 + $0x370] sm:$0xff] }
  0xa6   : > { %1099 = vmatprep.subr.bf16.mxu0 %v1098_v60  ;;  %1035 = vmatprep.subr.bf16.mxu1 %v1034_v0  ;;  %v1054_v60 = vpack.c.bf16 %v617_v53, %v615_v52  ;;  %v619_v0 = vld [vmem:[#allocation8 + $0x188] sm:$0xff]  ;;  %v1120_v2 = vpack.c.bf16 %v680_v59, %v678_v58 }
  0xa9   : > { %1101 = vmatpush1.bf16.msra.mxu0 %v1100_v6  ;;  %1037 = vmatpush1.bf16.msra.mxu1 %v1036_v7  ;;  %v682_v6 = vld [vmem:[#allocation8 + $0x380] sm:$0xff]  ;;  %v684_v7 = vld [vmem:[#allocation8 + $0x390] sm:$0xff] }
  0xaa   : > { %1103 = vmatprep.subr.bf16.mxu0 %v1102_v8  ;;  %1039 = vmatprep.subr.bf16.mxu1 %v1038_v12  ;;  %v1058_v8 = vpack.c.bf16 %v621_v1, %v619_v0  ;;  %v623_v12 = vld [vmem:[#allocation8 + $0x1a8] sm:$0xff]  ;;  %v1124_v14 = vpack.c.bf16 %v684_v7, %v682_v6  ;;  %v698_v7 = vld [vmem:[%s1626_s4] sm:$0x3] }
  0xad   : > { %1105 = vmatpush1.bf16.msra.mxu0 %v1104_v18  ;;  %1041 = vmatpush1.bf16.msra.mxu1 %v1040_v19  ;;  %v686_v18 = vld [vmem:[#allocation8 + $0x3a0] sm:$0xff]  ;;  %v688_v19 = vld [vmem:[#allocation8 + $0x3b0] sm:$0xff] }
  0xae   : > { %1107 = vmatprep.subr.bf16.mxu0 %v1106_v20  ;;  %1043 = vmatprep.subr.bf16.mxu1 %v1042_v24  ;;  %v1062_v20 = vpack.c.bf16 %v625_v13, %v623_v12  ;;  %v627_v24 = vld [vmem:[#allocation8 + $0x1c8] sm:$0xff]  ;;  %v1128_v26 = vpack.c.bf16 %v688_v19, %v686_v18 }
  0xaf   : > { %v1066_v29 = vpack.c.bf16 %v629_v25, %v627_v24 }
  0xb1   : > { %1109 = vmatpush1.bf16.msra.mxu0 %v1108_v30  ;;  %1045 = vmatpush1.bf16.msra.mxu1 %v1044_v31  ;;  %v626_v30 = vld [vmem:[#allocation8 + $0x1c0] sm:$0xff]  ;;  %v628_v31 = vld [vmem:[#allocation8 + $0x1d0] sm:$0xff] }
  0xb2   : > { %1111 = vmatprep.subr.bf16.mxu0 %v1110_v32  ;;  %1047 = vmatprep.subr.bf16.mxu1 %v1046_v36  ;;  %v690_v32 = vld [vmem:[#allocation8 + $0x3c0] sm:$0xff]  ;;  %v1068_v33 = vpack.c.bf16 %v628_v31, %v626_v30  ;;  %v631_v36 = vld [vmem:[#allocation8 + $0x1e8] sm:$0xff] }
  0xb3   : > { %v1132_v35 = vpack.c.bf16 %v692_v34, %v690_v32  ;;  %v1070_v39 = vpack.c.bf16 %v633_v37, %v631_v36 }
  0xb5   : > { %1113 = vmatpush1.bf16.msra.mxu0 %v1112_v42  ;;  %1049 = vmatpush1.bf16.msra.mxu1 %v1048_v43  ;;  %v632_v42 = vld [vmem:[#allocation8 + $0x1f0] sm:$0xff]  ;;  %v1134_v43 = vpack.c.bf16 %v697_v40, %v695_v38 }
  0xb6   : > { %1115 = vmatprep.subr.bf16.mxu0 %v1114_v44  ;;  %1051 = vmatprep.subr.bf16.mxu1 %v1050_v48  ;;  %v1072_v44 = vpack.c.bf16 %v632_v42, %v630_v41  ;;  %v401_v48 = vlaneseq }
  0xb8   : > { %v402_v49 = vshrl.u32 %v401_v48, 7 }
  0xb9   : > { %1117 = vmatpush1.bf16.msra.mxu0 %v1116_v54  ;;  %1053 = vmatpush1.bf16.msra.mxu1 %v1052_v55 }
  0xba   : > { %1119 = vmatprep.subr.bf16.mxu0 %v1118_v56  ;;  %1055 = vmatprep.subr.bf16.mxu1 %v1054_v60  ;;  %v403_v50 = vsub.s32 0, %v402_v49  ;;  %v411_v52 = vsub.s32 2, %v402_v49  ;;  %v407_v53 = vsub.s32 1, %v402_v49  ;;  %v415_v54 = vsub.s32 3, %v402_v49 }
  0xbc   : > { %v404_v55 = vrot.slane %v399_v51, %v403_v50  ;;  %v412_v56 = vrot.slane %v399_v51, %v411_v52  ;;  %v408_v57 = vrot.slane %v399_v51, %v407_v53  ;;  %v416_v58 = vrot.slane %v399_v51, %v415_v54 }
  0xbd   : > { %1121 = vmatpush1.bf16.msra.mxu0 %v1120_v2  ;;  %1057 = vmatpush1.bf16.msra.mxu1 %v1056_v3  ;;  %v707_v9 = vrot.slane %v698_v7, %v407_v53  ;;  %v859_v18 = vrot.slane %v854_v11, %v403_v50 }
  0xbe   : > { %1123 = vmatprep.subr.bf16.mxu0 %v1122_v4  ;;  %1059 = vmatprep.subr.bf16.mxu1 %v1058_v8  ;;  %v703_v8 = vrot.slane %v698_v7, %v403_v50 }
  0xc1   : > { %1125 = vmatpush1.bf16.msra.mxu0 %v1124_v14  ;;  %1061 = vmatpush1.bf16.msra.mxu1 %v1060_v15 }
  0xc2   : > { %1127 = vmatprep.subr.bf16.mxu0 %v1126_v16  ;;  %1063 = vmatprep.subr.bf16.mxu1 %v1062_v20  ;;  %v863_v20 = vrot.slane %v854_v11, %v407_v53 }
  0xc5   : > { %1129 = vmatpush1.bf16.msra.mxu0 %v1128_v26  ;;  %1065 = vmatpush1.bf16.msra.mxu1 %v1064_v27 }
  0xc6   : > { %1131 = vmatprep.subr.bf16.mxu0 %v1130_v28  ;;  %1067 = vmatprep.subr.bf16.mxu1 %v1066_v29  ;;  %v990_v28 = vld [vmem:[#allocation3] ss:$0 sm:$0xff] }
  0xc9   : > { %1069 = vmatpush1.bf16.msra.mxu1 %v1068_v33  ;;  %1133 = vmatpush1.bf16.msra.mxu0 %v1132_v35 }
  0xca   : > { %1071 = vmatprep.subr.bf16.mxu1 %v1070_v39  ;;  %1135 = vmatprep.subr.bf16.mxu0 %v1134_v43 }
  0xcd   : > { %1073 = vmatpush1.bf16.msra.mxu1 %v1072_v44  ;;  %1137 = vmatpush1.bf16.msra.mxu0 %v1136_v47 }
 0x163   : > { %v490_v59 = vpop.f32.mrb[0].mxu0  ;;  %v561_v61 = vpop.f32.mrb[0].mxu1 }
 0x164   : > { %v491_v60 = vadd.f32 %v490_v59, %v404_v55  ;;  %v492_v62 = vpop.f32.mrb[1].mxu0  ;;  %v562_v63 = vadd.f32 %v561_v61, %v412_v56  ;;  %v563_v1 = vpop.f32.mrb[1].mxu1 }
 0x165   : > { %v493_v0 = vadd.f32 %v492_v62, %v408_v57  ;;  %v564_v2 = vadd.f32 %v563_v1, %v416_v58 }
 0x166   : > { %v568_v3 = vmax.f32 %v562_v63, 0.0  ;;  %v566_v5 = vmax.f32 %v491_v60, 0.0 }
 0x167   : > { %v567_v4 = vmax.f32 %v493_v0, 0.0  ;;  %v569_v6 = vmax.f32 %v564_v2, 0.0 }
 0x169   : > { %774 = vmatprep.mubr.f32.mxu1 %v567_v4  ;;  %845 = vmatprep.mubr.f32.mxu0 %v569_v6 }
 0x16a   : > { %775 = vmatmul.mubr.f32.vlgmr.msra.gmra.mrb[2].mxu1 %v566_v5  ;;  %846 = vmatmul.mubr.f32.vlgmr.msra.gmra.mrb[2].mxu0 %v568_v3 }
 0x23d   : > { %v776_v10 = vpop.f32.mrb[2].mxu1  ;;  %v847_v13 = vpop.f32.mrb[2].mxu0 }
 0x23e   : > { %v777_v12 = vadd.f32 %v776_v10, %v703_v8  ;;  %v778_v14 = vpop.f32.mrb[3].mxu1  ;;  %v849_v16 = vpop.f32.mrb[3].mxu0 }
 0x23f   : > { %v779_v15 = vadd.f32 %v778_v14, %v707_v9 }
 0x240   : > { %v848_v17 = vadd.f32 %v847_v13, %v777_v12 }
 0x241   : > { %v850_v19 = vadd.f32 %v849_v16, %v779_v15 }
 0x242   : > { %v852_v21 = vmax.f32 %v848_v17, 0.0 }
 0x243   : > { %v853_v22 = vmax.f32 %v850_v19, 0.0 }
 0x244   : > { %v866_v23 = vmul.f32 %v859_v18, %v852_v21 }
 0x245   : > { %v867_v24 = vmul.f32 %v863_v20, %v853_v22 }
 0x246   : > { %v869_v25 = vsel %vm868_vm4, %v866_v23, 0.0 }
 0x247   : > { %v870_v26 = vsel %vm868_vm4, %v867_v24, 0.0 }
 0x248   : > { %v871_v27 = vadd.f32 %v870_v26, %v869_v25 }
 0x24a   : > { %872 = vadd.xlane.f32.xlu0 %v871_v27 }
 0x2d7   : > { %v873_v29 = vpop.xlane.xlu0 %872 }
 0x2d8   : > { %v881_v30 = vadd.f32 %v990_v28, %v873_v29 }
 0x2da   : > { %883 = vst.msk [vmem:[%s1629_s7] sm:$0x3] %vm882_vm5, %v881_v30 }
 0x2db PF: > { %s23_s8 = sadd.s32 1, %s1366_s8   ;;  %s1644_s26 = smov %s1350_s27 }
 0x2dc   : > { %p20_p6 = scmp.ge.s32.totalorder %s23_s8, 4   ;;  %s1645_s27 = smov %s1354_s28 }
 0x2dd   : > { %s1646_s28 = smov %s1544_s25  ;;  %s1647_s29 = smov %s1362_s30 }
 0x2de   : > { %s1648_s30 = smov %s1650_s18  ;;  %22 = sbr.rel (!%p20_p6) target bundleno = 8 (0x8), region = 104 }
 0x2e5   :  { %903 = vsyncpa [#allocation5], 1 }
 0x2e6   :  { %905 = vsyncpa [#allocation5 + $0x1], 1 }
 0x2e7   :  { %906 = vsyncpa [#allocation7], 1 }

</bundles_post_ra>
